<compile_context>
chip_gen: v7x
topology: tpu7x:2x2x1
jax: 0.10.0
libtpu: 0.0.40
codegen_flags: <defaults>
</compile_context>

<pallas_src>
import functools

import jax
import jax.numpy as jnp
from jax.experimental import pallas as pl
from jax.experimental.pallas import tpu as pltpu


def _sid_kernel(model_ref, target_ref, out_ref, *, threshold, clamp_min):
    m = model_ref[...]          # (TILE_B, N) float32
    t = target_ref[...]

    nan_mask = jnp.isnan(t) | jnp.isnan(m)

    # model_spectra[model_spectra < threshold] = threshold
    # (NaN < threshold is False, so NaNs pass through — matches torch.)
    m = jnp.where(m < threshold, jnp.float32(threshold), m)

    # Per-row normalization, ignoring nan-masked entries in the sum.
    # Hoist the divide: one reciprocal per row, broadcast multiply per element.
    row_sum = jnp.sum(jnp.where(nan_mask, 0.0, m), axis=1, keepdims=True)
    m = m * (1.0 / row_sum)

    # Clamp(min=1e-6). Masked lanes may carry NaN/Inf here; the final select zeroes them.
    m = jnp.maximum(m, jnp.float32(clamp_min))
    t = jnp.maximum(t, jnp.float32(clamp_min))

    # Symmetric KL / SID per element: log(m/t)*m + log(t/m)*t == (m - t) * log(m / t).
    elem = (m - t) * jnp.log(m / t)
    elem = jnp.where(nan_mask, 0.0, elem)

    # Per-block partial sum; no carried state -> grid steps are independent ("parallel").
    out_ref[0, 0] = jnp.sum(elem)


def sid_loss(model_spectra, target_spectra, n_data_points,
             threshold: float = 1e-10, eps: float = 1e-8):
    """Matches SID.forward (eps is stored but unused by the torch module)."""
    del eps  # unused in the reference forward pass
    model = jnp.asarray(model_spectra, jnp.float32).reshape(-1, n_data_points)
    target = jnp.asarray(target_spectra, jnp.float32).reshape(-1, n_data_points)
    b, n = model.shape

    # Row tile: multiple of 8 sublanes, sized so each input block is ~4 MiB,
    # capped at round_up(B, 8).
    bytes_per_row = 4 * n
    target_block_bytes = 4 * 1024 * 1024
    tile_b = max(8, (target_block_bytes // bytes_per_row) // 8 * 8)
    tile_b = min(tile_b, ((b + 7) // 8) * 8)

    block_bytes = tile_b * bytes_per_row
    # 2 inputs x 2 pipeline buffers + ~2 block-sized compiler temporaries.
    vmem_budget = min(48 * 1024 * 1024, max(16 * 1024 * 1024, 7 * block_bytes))
    if 7 * block_bytes > 48 * 1024 * 1024:
        # TODO(synk): add a column grid axis + two-pass normalization for huge spectra.
        raise ValueError(
            f"n_data_points={n} too large for a single row block; column tiling needed.")

    b_padded = ((b + tile_b - 1) // tile_b) * tile_b
    if b_padded != b:
        pad = ((0, b_padded - b), (0, 0))
        # NaN rows are fully nan-masked inside the kernel -> contribute 0 loss.
        model = jnp.pad(model, pad, constant_values=float("nan"))
        target = jnp.pad(target, pad, constant_values=float("nan"))

    num_blocks = b_padded // tile_b
    kernel = functools.partial(
        _sid_kernel,
        threshold=float(threshold),
        clamp_min=1e-6,
    )

    partials = pl.pallas_call(
        kernel,
        out_shape=jax.ShapeDtypeStruct((num_blocks, 1), jnp.float32),
        grid_spec=pltpu.PrefetchScalarGridSpec(
            num_scalar_prefetch=0,
            grid=(num_blocks,),
            in_specs=[
                pl.BlockSpec((tile_b, n), lambda i: (i, 0)),
                pl.BlockSpec((tile_b, n), lambda i: (i, 0)),
            ],
            out_specs=pl.BlockSpec((1, 1), lambda i: (i, 0),
                                   memory_space=pltpu.SMEM),
        ),
        compiler_params=pltpu.CompilerParams(
            dimension_semantics=("parallel",),
            vmem_limit_bytes=int(vmem_budget),
        ),
        cost_estimate=pl.CostEstimate(
            flops=int(12 * b_padded * n),
            transcendentals=int(2 * b_padded * n),
            bytes_accessed=int(2 * 4 * b_padded * n + 4 * num_blocks),
        ),
    )(model, target)

    # mean over the *true* number of rows (padded NaN rows contribute exactly 0).
    return jnp.sum(partials) / jnp.float32(b)


def _sid_reference(model_spectra, target_spectra, n_data_points,
                   threshold: float = 1e-10):
    """Pure-JAX mirror of the torch forward for verification."""
    target = jnp.asarray(target_spectra, jnp.float32).reshape(-1, n_data_points)
    model = jnp.asarray(model_spectra, jnp.float32).reshape(-1, n_data_points)
    nan_mask = jnp.isnan(target) | jnp.isnan(model)
    model = jnp.where(model < threshold, threshold, model)
    sum_model = jnp.sum(jnp.where(nan_mask, 0.0, model), axis=1, keepdims=True)
    model = model / sum_model
    target = jnp.where(nan_mask, 1.0, target)
    model = jnp.where(nan_mask, 1.0, model)
    model = jnp.maximum(model, 1e-6)
    target = jnp.maximum(target, 1e-6)
    loss = jnp.log(model / target) * model + jnp.log(target / model) * target
    loss = jnp.where(nan_mask, 0.0, loss)
    return jnp.mean(jnp.sum(loss, axis=1))


if __name__ == "__main__":
    key = jax.random.PRNGKey(0)
    k1, k2 = jax.random.split(key)

    B, N = 6, 200  # 6 spectra, n_data_points = 200 (deliberately not 8/128-aligned)
    model = jax.random.uniform(k1, (B, N), jnp.float32, minval=0.0, maxval=1.0)
    target = jax.random.uniform(k2, (B, N), jnp.float32, minval=0.0, maxval=1.0)
    target = target / jnp.sum(target, axis=1, keepdims=True)

    # Inject a couple of NaNs to exercise the nan_mask path.
    model = model.at[1, 7].set(jnp.nan)
    target = target.at[3, 0].set(jnp.nan)

    loss = sid_loss(model.reshape(-1), target.reshape(-1), n_data_points=N)
    jax.block_until_ready(loss)

    ref = _sid_reference(model, target, N)
    assert jnp.allclose(loss, ref, atol=1e-5, rtol=1e-5), (loss, ref)

    print("KERNEL_OK")
</pallas_src>

<mosaic_0001>
module attributes {stable_mosaic.version = 11 : i64} {
  func.func @_sid_kernel(%arg0: i32, %arg1: memref<8x200xf32, #tpu.memory_space<vmem>>, %arg2: memref<8x200xf32, #tpu.memory_space<vmem>>, %arg3: memref<1x1xf32, #tpu.memory_space<smem>>) attributes {dimension_semantics = [#tpu.dimension_semantics<parallel>], iteration_bounds = array<i64: 1>, scalar_prefetch = 0 : i64, scratch_operands = 0 : i64, tpu.core_type = #tpu.core_type<tc>, window_params = [{transform_indices = @transform_0, window_bounds = array<i64: 8, 200>}, {transform_indices = @transform_1, window_bounds = array<i64: 8, 200>}, {transform_indices = @transform_2, window_bounds = array<i64: 1, 1>}]} {
    %c0 = arith.constant 0 : index
    %c0_0 = arith.constant 0 : index
    %0 = vector.load %arg1[%c0, %c0_0] : memref<8x200xf32, #tpu.memory_space<vmem>>, vector<8x200xf32>
    %c0_1 = arith.constant 0 : index
    %c0_2 = arith.constant 0 : index
    %1 = vector.load %arg2[%c0_1, %c0_2] : memref<8x200xf32, #tpu.memory_space<vmem>>, vector<8x200xf32>
    %2 = arith.cmpf one, %1, %1 : vector<8x200xf32>
    %3 = arith.cmpf one, %0, %0 : vector<8x200xf32>
    %4 = arith.ori %2, %3 : vector<8x200xi1>
    %cst = arith.constant 1.000000e-10 : f32
    %5 = vector.broadcast %cst : f32 to vector<8x200xf32>
    %6 = arith.cmpf olt, %0, %5 : vector<8x200xf32>
    %cst_3 = arith.constant 1.000000e-10 : f32
    %7 = vector.broadcast %cst_3 : f32 to vector<8x200xf32>
    %8 = arith.select %6, %7, %0 : vector<8x200xi1>, vector<8x200xf32>
    %cst_4 = arith.constant 0.000000e+00 : f32
    %9 = vector.broadcast %cst_4 : f32 to vector<8x200xf32>
    %10 = arith.select %4, %9, %8 : vector<8x200xi1>, vector<8x200xf32>
    %cst_5 = arith.constant dense<0.000000e+00> : vector<8xf32>
    %11 = vector.multi_reduction <add>, %10, %cst_5 [1] : vector<8x200xf32> to vector<8xf32>
    %12 = vector.shape_cast %11 : vector<8xf32> to vector<8x1xf32>
    %cst_6 = arith.constant 1.000000e+00 : f32
    %13 = vector.broadcast %cst_6 : f32 to vector<8x1xf32>
    %14 = arith.divf %13, %12 : vector<8x1xf32>
    %15 = vector.broadcast %14 : vector<8x1xf32> to vector<8x200xf32>
    %16 = arith.mulf %8, %15 : vector<8x200xf32>
    %cst_7 = arith.constant 9.99999997E-7 : f32
    %17 = vector.broadcast %cst_7 : f32 to vector<8x200xf32>
    %18 = arith.maximumf %16, %17 : vector<8x200xf32>
    %cst_8 = arith.constant 9.99999997E-7 : f32
    %19 = vector.broadcast %cst_8 : f32 to vector<8x200xf32>
    %20 = arith.maximumf %1, %19 : vector<8x200xf32>
    %21 = arith.subf %18, %20 : vector<8x200xf32>
    %22 = arith.divf %18, %20 : vector<8x200xf32>
    %23 = math.log %22 : vector<8x200xf32>
    %24 = arith.mulf %21, %23 : vector<8x200xf32>
    %cst_9 = arith.constant 0.000000e+00 : f32
    %25 = vector.broadcast %cst_9 : f32 to vector<8x200xf32>
    %26 = arith.select %4, %25, %24 : vector<8x200xi1>, vector<8x200xf32>
    %27 = vector.shape_cast %26 : vector<8x200xf32> to vector<1x8x200xf32>
    %cst_10 = arith.constant dense<0.000000e+00> : vector<1xf32>
    %28 = vector.multi_reduction <add>, %27, %cst_10 [1, 2] : vector<1x8x200xf32> to vector<1xf32>
    %29 = vector.shape_cast %28 : vector<1xf32> to vector<1x1x1xf32>
    %30 = vector.extract %29[0, 0, 0] : f32 from vector<1x1x1xf32>
    %c0_11 = arith.constant 0 : index
    %c0_12 = arith.constant 0 : index
    %31 = memref.load %arg3[%c0_11, %c0_12] : memref<1x1xf32, #tpu.memory_space<smem>>
    memref.store %30, %arg3[%c0_11, %c0_12] : memref<1x1xf32, #tpu.memory_space<smem>>
    return
  }
  func.func @transform_0(%arg0: i32) -> (i32, i32) {
    %c0_i32 = arith.constant 0 : i32
    %c0_i32_0 = arith.constant 0 : i32
    return %arg0, %c0_i32 : i32, i32
  }
  func.func @transform_1(%arg0: i32) -> (i32, i32) {
    %c0_i32 = arith.constant 0 : i32
    %c0_i32_0 = arith.constant 0 : i32
    return %arg0, %c0_i32 : i32, i32
  }
  func.func @transform_2(%arg0: i32) -> (i32, i32) {
    %c0_i32 = arith.constant 0 : i32
    %c0_i32_0 = arith.constant 0 : i32
    return %arg0, %c0_i32 : i32, i32
  }
}

</mosaic_0001>

<bundles_post_ra>
// kernel: tpu_custom_call.1
= control target key start
LH: loop header
LB: loop body
LE: loop exit
PB: predicated region body
PF: predicated region fallthrough
CT: control target
= control target key end

     0   :  { %7 = vsyncpa [#allocation3], 0  ;;  %s254_s0 = inlined_call_operand.hbm [shape: f32[8,200], index: 0, kind: input, shape index: {}]   ;;  %s255_s1 = inlined_call_operand.hbm [shape: f32[8,200], index: 1, kind: input, shape index: {}]   ;;  %s256_s2 = inlined_call_operand.hbm [shape: f32[1,1], index: 2, kind: output, shape index: {}]  }
   0x1   :  { %8 = vsyncpa [#allocation6], 0 }
   0x2   :  { %9 = vsyncpa [#allocation4], 0  ;;  %s182_s9 = smov [#allocation2]   ;;  %s183_s11 = smov [#allocation5]  }
   0x3   :  { %s16_s10 = sshll.u32 %s182_s9, 4  ;;  %s26_s12 = sshll.u32 %s183_s11, 4  ;;  %s17_s10 = int_to_ptr.vmem [resolvable:$true] %s16_s10  ;;  %s27_s12 = int_to_ptr.vmem [resolvable:$true] %s26_s12 }
   0x4   :  { %s122_s15 = scalar_lea.hbm %s254_s0, 256 }
   0x5   :  { %p123_p0 = scmp.ne.s32.totalorder %s254_s0, %s122_s15  ;;  %p126_p1 = scmp.lt.u32.totalorder %s122_s15, %s254_s0 }
   0x7   :  { %p128_p2 = pnand %p126_p1, %p123_p0 }
   0x9   :  { %131 = shalt.err (!%p128_p2)
}
   0xa   :  { %s132_s20 = scalar_lea.vmem %s17_s10, 256  ;;  %p137_p4 = scmp.lt.s32.totalorder %s17_s10, %s17_s10 }
   0xb   :  { %p133_p3 = scmp.ne.s32.totalorder %s17_s10, %s132_s20  ;;  %p138_p5 = scmp.lt.s32.totalorder %s132_s20, %s132_s20 }
   0xd   :  { %p139_p6 = por %p138_p5, %p137_p4 }
   0xf   :  { %p140_p7 = pnand %p139_p6, %p133_p3 }
  0x11   :  { %143 = shalt.err (!%p140_p7)
}
  0x12   :  { %19 = dma.hbm_to_vmem [thread:$0]  %s254_s0, 256, %s17_s10, [#allocation3]  }
  0x13   :  { %s144_s25 = scalar_lea.hbm %s255_s1, 256 }
  0x14   :  { %p145_p8 = scmp.ne.s32.totalorder %s255_s1, %s144_s25  ;;  %p148_p9 = scmp.lt.u32.totalorder %s144_s25, %s255_s1 }
  0x16   :  { %p150_p10 = pnand %p148_p9, %p145_p8 }
  0x18   :  { %153 = shalt.err (!%p150_p10)
}
  0x19   :  { %s154_s30 = scalar_lea.vmem %s27_s12, 256  ;;  %p159_p12 = scmp.lt.s32.totalorder %s27_s12, %s27_s12 }
  0x1a   :  { %p155_p11 = scmp.ne.s32.totalorder %s27_s12, %s154_s30  ;;  %p160_p13 = scmp.lt.s32.totalorder %s154_s30, %s154_s30 }
  0x1c   :  { %p161_p0 = por %p160_p13, %p159_p12 }
  0x1e   :  { %p162_p1 = pnand %p161_p0, %p155_p11 }
  0x20   :  { %165 = shalt.err (!%p162_p1)
}
  0x21   :  { %29 = dma.hbm_to_vmem [thread:$0]  %s255_s1, 256, %s27_s12, [#allocation6]  }
  0x22   :  { %176 = dma.done.wait [#allocation3], 256  }
  0x23   :  { %177 = vsyncadd [#allocation3], 4294967040 }
  0x24   :  { %178 = dma.done.wait [#allocation6], 256  }
  0x25   :  { %179 = vsyncadd [#allocation6], 4294967040  ;;  %v36_v0 = vld [vmem:[#allocation2] sm:$0xff]  ;;  %v37_v1 = vld [vmem:[#allocation2 + $0x8] sm:$0xff]  ;;  %vm52_vm7 = vcmask 588800   ;;  %s166_s6 = scalar_lea.hbm %s256_s2, 16 }
  0x26   :  { %v38_v2 = vld [vmem:[#allocation5] sm:$0xff]  ;;  %v39_v3 = vld [vmem:[#allocation5 + $0x8] sm:$0xff]  ;;  %vm42_vm1 = vcmp.ne.f32.partialorder %v36_v0, %v36_v0  ;;  %vm43_vm2 = vcmp.ne.f32.partialorder %v37_v1, %v37_v1  ;;  %vm46_vm3 = vcmp.lt.f32.partialorder %v36_v0, 1e-10  ;;  %vm47_vm6 = vcmp.lt.f32.partialorder %v37_v1, 1e-10  ;;  %p167_p2 = scmp.ne.s32.totalorder %s256_s2, %s166_s6  ;;  %p170_p3 = scmp.lt.u32.totalorder %s166_s6, %s256_s2 }
  0x27   :  { %vm40_vm0 = vcmp.ne.f32.partialorder %v38_v2, %v38_v2  ;;  %vm41_vm4 = vcmp.ne.f32.partialorder %v39_v3, %v39_v3  ;;  %v48_v5 = vsel %vm46_vm3, 1e-10, %v36_v0  ;;  %v49_v7 = vsel %vm47_vm6, 1e-10, %v37_v1 }
  0x28   :  { %vm224_vm5 = vmor %vm40_vm0, %vm42_vm1  ;;  %v63_v12 = vmax.f32 %v38_v2, 1e-06  ;;  %v64_v13 = vmax.f32 %v39_v3, 1e-06  ;;  %p172_p4 = pnand %p170_p3, %p167_p2 }
  0x29   :  { %vm228_vm8 = vmor %vm41_vm4, %vm43_vm2  ;;  %v50_v8 = vsel %vm224_vm5, 0.0, %v48_v5 }
  0x2a   :  { %v51_v9 = vsel %vm228_vm8, 0.0, %v49_v7 }
  0x2b   :  { %v53_v10 = vsel %vm52_vm7, %v51_v9, 0.0 }
  0x2c   :  { %v54_v11 = vadd.f32 %v53_v10, %v50_v8 }
  0x2e   :  { %55 = vadd.xlane.f32.xlu0 %v54_v11 }
  0xbb   :  { %v56_v14 = vpop.xlane.xlu0 %55 }
  0xbc   :  { %112 = vrcp.f32 %v56_v14 }
  0xbd   :  { %114 = vrcp.f32 %v63_v12 }
  0xbe   :  { %116 = vrcp.f32 %v64_v13 }
  0xc6   :  { %v113_v15 = vpop.eup %112 }
  0xc7   :  { %v115_v16 = vpop.eup %114  ;;  %v59_v17 = vmul.f32 %v113_v15, %v48_v5  ;;  %v60_v18 = vmul.f32 %v113_v15, %v49_v7 }
  0xc8   :  { %v117_v19 = vpop.eup %116 }
  0xc9   :  { %v61_v20 = vmax.f32 %v59_v17, 1e-06  ;;  %v62_v21 = vmax.f32 %v60_v18, 1e-06 }
  0xcb   :  { %v68_v22 = vmul.f32 %v115_v16, %v61_v20  ;;  %v70_v23 = vmul.f32 %v117_v19, %v62_v21  ;;  %v65_v26 = vsub.f32 %v61_v20, %v63_v12  ;;  %v66_v28 = vsub.f32 %v62_v21, %v64_v13 }
  0xcd   :  { %118 = vlog2.f32 %v68_v22 }
  0xce   :  { %120 = vlog2.f32 %v70_v23 }
  0xd7   :  { %v119_v24 = vpop.eup %118 }
  0xd8   :  { %v121_v25 = vpop.eup %120  ;;  %v72_v27 = vmul.f32 0.6931472, %v119_v24 }
  0xd9   :  { %v74_v29 = vmul.f32 0.6931472, %v121_v25 }
  0xda   :  { %v75_v30 = vmul.f32 %v72_v27, %v65_v26 }
  0xdb   :  { %v76_v31 = vmul.f32 %v74_v29, %v66_v28 }
  0xdc   :  { %v77_v32 = vsel %vm224_vm5, 0.0, %v75_v30 }
  0xdd   :  { %v78_v33 = vsel %vm228_vm8, 0.0, %v76_v31 }
  0xde   :  { %v79_v34 = vsel %vm52_vm7, %v78_v33, 0.0 }
  0xdf   :  { %v80_v35 = vadd.f32 %v79_v34, %v77_v32 }
  0xe1   :  { %81 = vadd.xlane.f32.xlu0 %v80_v35 }
 0x16e   :  { %v82_v36 = vpop.xlane.xlu0 %81 }
 0x16f   :  { %v83_v37 = vrot.slane %v82_v36, 4 }
 0x171   :  { %v84_v38 = vadd.f32 %v83_v37, %v82_v36 }
 0x173   :  { %v85_v39 = vrot.slane %v84_v38, 2 }
 0x175   :  { %v86_v40 = vadd.f32 %v85_v39, %v84_v38 }
 0x177   :  { %v87_v41 = vrot.slane %v86_v40, 1 }
 0x179   :  { %v88_v42 = vadd.f32 %v87_v41, %v86_v40 }
 0x17b   :  { %107 = vpush %v88_v42 }
 0x1ac   :  { %s108_s1 = spop %107 }
 0x1ad   :  { %91 = sst [smem:[#allocation7]] %s108_s1 }
 0x1ae   :  { %175 = shalt.err (!%p172_p4)
}
 0x1af   :  { %s184_s11 = smov [#allocation7]  }
 0x1b0   :  { %99 = dma.smem_to_hbm %s184_s11, 16, %s256_s2, [#allocation4]  }
 0x1b1   :  { %180 = dma.done.wait [#allocation4], 16  }
 0x1b2   :  { %181 = vsyncadd [#allocation4], 4294967280 }
 0x1b3   :  { %103 = sfence }
 0x1b4   :  { %104 = vsyncpa [#allocation3], 1 }
 0x1b5   :  { %105 = vsyncpa [#allocation6], 1 }
 0x1b6   :  { %106 = vsyncpa [#allocation4], 1 }

</bundles_post_ra>
